<compile_context>
chip_gen: v7x
topology: tpu7x:2x2x1
jax: 0.10.0
libtpu: 0.0.40
codegen_flags: <defaults>
</compile_context>

<pallas_src>
import functools

import jax
import jax.numpy as jnp
import numpy as np
from jax.experimental import pallas as pl
from jax.experimental.pallas import tpu as pltpu

INF = 1.0e9        # matches the module's `inf` default
LN_EPS = 1e-5      # torch.nn.LayerNorm default eps


def _layer_norm_f32(x, gamma, beta):
    mu = jnp.mean(x, axis=-1, keepdims=True)
    var = jnp.mean(jnp.square(x - mu), axis=-1, keepdims=True)
    return (x - mu) * jax.lax.rsqrt(var + LN_EPS) * gamma + beta


# --------------------------------------------------------------------------- #
# Pre-pass: triangle bias  tri[b, q, k, h] = (LN(x)[b, q, k, :] @ w_tri)[h]
# Row-tiled over q; shared by every attention row, so computed once per batch.
# --------------------------------------------------------------------------- #
def _tri_bias_kernel(x_ref, gamma_ref, beta_ref, wtri_ref, out_ref):
    R, N, C = x_ref.shape[1], x_ref.shape[2], x_ref.shape[3]
    H = out_ref.shape[3]

    x = x_ref[0].astype(jnp.float32)                       # [R, N, C]
    ln = _layer_norm_f32(x, gamma_ref[...], beta_ref[...])
    lnf = ln.reshape(R * N, C).astype(jnp.bfloat16)
    tri = jnp.dot(lnf, wtri_ref[...], preferred_element_type=jnp.float32)
    out_ref[0] = tri.reshape(R, N, H)


# --------------------------------------------------------------------------- #
# Main kernel: LN + fused QKVG projection + per-head biased softmax attention
# + gating + single output projection, for one (batch, row-tile) grid point.
# --------------------------------------------------------------------------- #
def _triangle_attention_kernel(x_ref, mask_ref, tri_ref, gamma_ref, beta_ref,
                               w_qkvg_ref, bg_ref, wo_ref, bo_ref, out_ref,
                               *, no_heads, c_hidden):
    R, N, C = x_ref.shape[1], x_ref.shape[2], x_ref.shape[3]
    H, D = no_heads, c_hidden
    HD = H * D

    x = x_ref[0].astype(jnp.float32)                       # [R, N, C]
    mask = mask_ref[0].astype(jnp.float32)                 # [R(row), N(key)]

    # LayerNorm (f32).  Recomputed here (cheap VPU work) instead of round-tripping
    # the normalized activations through HBM from the pre-pass.
    ln = _layer_norm_f32(x, gamma_ref[...], beta_ref[...])
    lnf = ln.reshape(R * N, C).astype(jnp.bfloat16)

    # Fused Q/K/V/G projection: one lane-dense matmul [R*N, C] x [C, 4*H*D].
    # w_q already carries the 1/sqrt(D) scale (folded in the wrapper).
    qkvg = jnp.dot(lnf, w_qkvg_ref[...],
                   preferred_element_type=jnp.float32)     # [R*N, 4*HD] f32

    g = jax.nn.sigmoid(qkvg[:, 3 * HD:4 * HD] + bg_ref[...])   # [R*N, HD] f32

    # Hoisted mask bias (applied on the key axis, broadcast over heads & queries).
    mbias = (INF * (mask - 1.0))[:, None, :]               # [R, 1, N]

    heads = []
    for h in range(H):                                     # static unroll, H small
        qh = qkvg[:, 0 * HD + h * D: 0 * HD + (h + 1) * D]
        kh = qkvg[:, 1 * HD + h * D: 1 * HD + (h + 1) * D]
        vh = qkvg[:, 2 * HD + h * D: 2 * HD + (h + 1) * D]
        qh = qh.astype(jnp.bfloat16).reshape(R, N, D)
        kh = kh.astype(jnp.bfloat16).reshape(R, N, D)
        vh = vh.astype(jnp.bfloat16).reshape(R, N, D)
        tri_h = tri_ref[0, h]                              # [Q, K] f32, lane-dense

        s = jnp.einsum('rqd,rkd->rqk', qh, kh,
                       preferred_element_type=jnp.float32)  # [R, Q, K] f32
        s = s + mbias + tri_h[None, :, :]
        s = s - jnp.max(s, axis=-1, keepdims=True)
        p = jnp.exp(s)
        p = p * pl.reciprocal(jnp.sum(p, axis=-1, keepdims=True), approx=True)

        oh = jnp.einsum('rqk,rkd->rqd', p.astype(jnp.bfloat16), vh,
                        preferred_element_type=jnp.float32)  # [R, Q, D] f32
        heads.append(oh)

    # Collect all heads (h, d) -> one gated, lane-dense output projection.
    o = jnp.concatenate(heads, axis=-1).reshape(R * N, HD)   # [R*N, HD] f32
    o = (o * g).astype(jnp.bfloat16)
    out = jnp.dot(o, wo_ref[...], preferred_element_type=jnp.float32) + bo_ref[...]
    out_ref[0] = out.reshape(R, N, C).astype(out_ref.dtype)


# --------------------------------------------------------------------------- #
# Wrapper
# --------------------------------------------------------------------------- #
def triangle_attention(x, mask, params, *, no_heads, c_hidden, starting=True,
                       tile_r=8):
    """x: [B, I, J, C_in], mask: [B, I, J] -> [B, I, J, C_in]"""
    if not starting:
        x = jnp.swapaxes(x, -2, -3)
        mask = jnp.swapaxes(mask, -1, -2)

    B, I, J, C = x.shape
    assert I == J, "triangle bias requires a square pair representation"
    N = I
    H, D = no_heads, c_hidden
    HD = H * D

    tile_r = min(tile_r, N)
    assert N % tile_r == 0, "row-tile size must divide the pair dimension"
    n_tiles = N // tile_r

    f32 = jnp.float32
    gamma = params["ln_gamma"].reshape(1, C).astype(f32)
    beta = params["ln_beta"].reshape(1, C).astype(f32)
    wtri = params["w_tri"].astype(jnp.bfloat16)                     # [C, H]

    # Fold the 1/sqrt(D) query scale into w_q; pack q|k|v|g into one bf16 weight.
    scale = 1.0 / float(D) ** 0.5
    w_qkvg = jnp.concatenate(
        [params["w_q"].astype(f32) * scale,
         params["w_k"].astype(f32),
         params["w_v"].astype(f32),
         params["w_g"].astype(f32)], axis=-1).astype(jnp.bfloat16)  # [C, 4*HD]
    bg = params["b_g"].reshape(1, HD).astype(f32)
    wo = params["w_o"].astype(jnp.bfloat16)                         # [HD, C]
    bo = params["b_o"].reshape(1, C).astype(f32)

    # ---- pre-pass: triangle bias [B, N, N, H] -------------------------------
    tri_raw = pl.pallas_call(
        _tri_bias_kernel,
        out_shape=jax.ShapeDtypeStruct((B, N, N, H), f32),
        grid=(B, n_tiles),
        in_specs=[
            pl.BlockSpec((1, tile_r, N, C), lambda b, i: (b, i, 0, 0)),
            pl.BlockSpec((1, C), lambda b, i: (0, 0)),
            pl.BlockSpec((1, C), lambda b, i: (0, 0)),
            pl.BlockSpec((C, H), lambda b, i: (0, 0)),
        ],
        out_specs=pl.BlockSpec((1, tile_r, N, H), lambda b, i: (b, i, 0, 0)),
        compiler_params=pltpu.CompilerParams(
            dimension_semantics=("parallel", "parallel")),
    )(x, gamma, beta, wtri)

    # Lane-dense layout for the main kernel: [B, H, N(query), N(key)].
    tri = jnp.transpose(tri_raw, (0, 3, 1, 2))

    # ---- main attention kernel ----------------------------------------------
    kernel = functools.partial(_triangle_attention_kernel,
                               no_heads=H, c_hidden=D)

    out = pl.pallas_call(
        kernel,
        out_shape=jax.ShapeDtypeStruct((B, N, N, C), x.dtype),
        grid=(B, n_tiles),
        in_specs=[
            pl.BlockSpec((1, tile_r, N, C), lambda b, i: (b, i, 0, 0)),   # x row tile
            pl.BlockSpec((1, tile_r, N), lambda b, i: (b, i, 0)),         # mask row tile
            pl.BlockSpec((1, H, N, N), lambda b, i: (b, 0, 0, 0)),        # tri bias (per batch)
            pl.BlockSpec((1, C), lambda b, i: (0, 0)),                    # ln gamma
            pl.BlockSpec((1, C), lambda b, i: (0, 0)),                    # ln beta
            pl.BlockSpec((C, 4 * HD), lambda b, i: (0, 0)),               # fused qkvg weight
            pl.BlockSpec((1, HD), lambda b, i: (0, 0)),                   # gate bias
            pl.BlockSpec((HD, C), lambda b, i: (0, 0)),                   # output weight
            pl.BlockSpec((1, C), lambda b, i: (0, 0)),                    # output bias
        ],
        out_specs=pl.BlockSpec((1, tile_r, N, C), lambda b, i: (b, i, 0, 0)),
        compiler_params=pltpu.CompilerParams(
            dimension_semantics=("parallel", "parallel"),
            vmem_limit_bytes=64 * 1024 * 1024),
    )(x, mask, tri, gamma, beta, w_qkvg, bg, wo, bo)

    if not starting:
        out = jnp.swapaxes(out, -2, -3)
    return out


# --------------------------------------------------------------------------- #
# Pure-JAX reference mirroring the PyTorch forward pass (f32 end-to-end).
# --------------------------------------------------------------------------- #
def triangle_attention_ref(x, mask, params, *, no_heads, c_hidden, starting=True):
    if not starting:
        x = jnp.swapaxes(x, -2, -3)
        mask = jnp.swapaxes(mask, -1, -2)
    H, D = no_heads, c_hidden

    mu = jnp.mean(x, axis=-1, keepdims=True)
    var = jnp.mean(jnp.square(x - mu), axis=-1, keepdims=True)
    ln = (x - mu) / jnp.sqrt(var + LN_EPS) * params["ln_gamma"] + params["ln_beta"]

    mask_bias = (INF * (mask - 1.0))[..., :, None, None, :]               # [B, I, 1, 1, J]
    tri = jnp.einsum('bijc,ch->bhij', ln, params["w_tri"])[:, None]       # [B, 1, H, I, J]

    def proj(w):
        y = jnp.einsum('bijc,ce->bije', ln, w)
        return y.reshape(*y.shape[:-1], H, D)

    q = proj(params["w_q"]) / jnp.sqrt(float(D))
    k = proj(params["w_k"])
    v = proj(params["w_v"])
    q = jnp.swapaxes(q, -2, -3)   # [B, I, H, Q, D]
    k = jnp.swapaxes(k, -2, -3)
    v = jnp.swapaxes(v, -2, -3)

    a = jnp.einsum('bihqd,bihkd->bihqk', q, k) + mask_bias + tri
    a = jax.nn.softmax(a, axis=-1)
    o = jnp.einsum('bihqk,bihkd->biqhd', a, v)                            # [B, I, Q, H, D]

    g = jax.nn.sigmoid(jnp.einsum('bijc,ce->bije', ln, params["w_g"]) + params["b_g"])
    g = g.reshape(*g.shape[:-1], H, D)
    o = o * g
    o = o.reshape(*o.shape[:-2], H * D)
    out = jnp.einsum('bije,ec->bijc', o, params["w_o"]) + params["b_o"]

    if not starting:
        out = jnp.swapaxes(out, -2, -3)
    return out


if __name__ == "__main__":
    B, N, C_IN = 2, 16, 32
    NO_HEADS, C_HIDDEN = 4, 16          # C_HIDDEN = per-head hidden dim (as used by Attention)

    key = jax.random.PRNGKey(0)
    ks = jax.random.split(key, 13)

    params = {
        "ln_gamma": 1.0 + 0.1 * jax.random.normal(ks[0], (C_IN,), jnp.float32),
        "ln_beta": 0.1 * jax.random.normal(ks[1], (C_IN,), jnp.float32),
        "w_tri": 0.1 * jax.random.normal(ks[2], (C_IN, NO_HEADS), jnp.float32),
        "w_q": 0.1 * jax.random.normal(ks[3], (C_IN, NO_HEADS * C_HIDDEN), jnp.float32),
        "w_k": 0.1 * jax.random.normal(ks[4], (C_IN, NO_HEADS * C_HIDDEN), jnp.float32),
        "w_v": 0.1 * jax.random.normal(ks[5], (C_IN, NO_HEADS * C_HIDDEN), jnp.float32),
        "w_g": 0.1 * jax.random.normal(ks[6], (C_IN, NO_HEADS * C_HIDDEN), jnp.float32),
        "b_g": 0.1 * jax.random.normal(ks[7], (NO_HEADS * C_HIDDEN,), jnp.float32),
        "w_o": 0.1 * jax.random.normal(ks[8], (NO_HEADS * C_HIDDEN, C_IN), jnp.float32),
        "b_o": 0.1 * jax.random.normal(ks[9], (C_IN,), jnp.float32),
    }

    x = jax.random.normal(ks[10], (B, N, N, C_IN), jnp.float32)
    mask = (jax.random.uniform(ks[11], (B, N, N)) > 0.15).astype(jnp.float32)

    out = triangle_attention(x, mask, params,
                             no_heads=NO_HEADS, c_hidden=C_HIDDEN,
                             starting=True, tile_r=8)
    out = jax.block_until_ready(out)

    ref = triangle_attention_ref(x, mask, params,
                                 no_heads=NO_HEADS, c_hidden=C_HIDDEN, starting=True)
    ref = jax.block_until_ready(ref)

    # bf16 MXU inputs (f32 accumulation / f32 softmax) vs the pure-f32 reference:
    # tolerance loosened accordingly, per the performance review.
    np.testing.assert_allclose(np.asarray(out), np.asarray(ref), rtol=2e-2, atol=2e-2)
    print("KERNEL_OK")
</pallas_src>

<mosaic_0001>
module attributes {stable_mosaic.version = 11 : i64} {
  func.func @_tri_bias_kernel(%arg0: i32, %arg1: i32, %arg2: memref<1x8x16x32xf32, #tpu.memory_space<vmem>>, %arg3: memref<1x32xf32, #tpu.memory_space<vmem>>, %arg4: memref<1x32xf32, #tpu.memory_space<vmem>>, %arg5: memref<32x4xbf16, #tpu.memory_space<vmem>>, %arg6: memref<1x8x16x4xf32, #tpu.memory_space<vmem>>) attributes {dimension_semantics = [#tpu.dimension_semantics<parallel>, #tpu.dimension_semantics<parallel>], iteration_bounds = array<i64: 2, 2>, scalar_prefetch = 0 : i64, scratch_operands = 0 : i64, tpu.core_type = #tpu.core_type<tc>, window_params = [{transform_indices = @transform_0, window_bounds = array<i64: 1, 8, 16, 32>}, {pipeline_mode = #tpu.pipeline_mode<synchronous>, transform_indices = @transform_1, window_bounds = array<i64: 1, 32>}, {pipeline_mode = #tpu.pipeline_mode<synchronous>, transform_indices = @transform_2, window_bounds = array<i64: 1, 32>}, {pipeline_mode = #tpu.pipeline_mode<synchronous>, transform_indices = @transform_3, window_bounds = array<i64: 32, 4>}, {transform_indices = @transform_4, window_bounds = array<i64: 1, 8, 16, 4>}]} {
    %c0 = arith.constant 0 : index
    %c0_0 = arith.constant 0 : index
    %c0_1 = arith.constant 0 : index
    %c0_2 = arith.constant 0 : index
    %0 = vector.load %arg2[%c0, %c0_0, %c0_1, %c0_2] : memref<1x8x16x32xf32, #tpu.memory_space<vmem>>, vector<1x8x16x32xf32>
    %1 = vector.shape_cast %0 : vector<1x8x16x32xf32> to vector<8x16x32xf32>
    %c0_3 = arith.constant 0 : index
    %c0_4 = arith.constant 0 : index
    %2 = vector.load %arg3[%c0_3, %c0_4] : memref<1x32xf32, #tpu.memory_space<vmem>>, vector<1x32xf32>
    %c0_5 = arith.constant 0 : index
    %c0_6 = arith.constant 0 : index
    %3 = vector.load %arg4[%c0_5, %c0_6] : memref<1x32xf32, #tpu.memory_space<vmem>>, vector<1x32xf32>
    %cst = arith.constant dense<0.000000e+00> : vector<8x16xf32>
    %4 = vector.multi_reduction <add>, %1, %cst [2] : vector<8x16x32xf32> to vector<8x16xf32>
    %5 = vector.shape_cast %4 : vector<8x16xf32> to vector<8x16x1xf32>
    %cst_7 = arith.constant 3.200000e+01 : f32
    %6 = vector.broadcast %cst_7 : f32 to vector<8x16x1xf32>
    %7 = arith.divf %5, %6 : vector<8x16x1xf32>
    %8 = vector.broadcast %7 : vector<8x16x1xf32> to vector<8x16x32xf32>
    %9 = arith.subf %1, %8 : vector<8x16x32xf32>
    %10 = arith.mulf %9, %9 : vector<8x16x32xf32>
    %cst_8 = arith.constant dense<0.000000e+00> : vector<8x16xf32>
    %11 = vector.multi_reduction <add>, %10, %cst_8 [2] : vector<8x16x32xf32> to vector<8x16xf32>
    %12 = vector.shape_cast %11 : vector<8x16xf32> to vector<8x16x1xf32>
    %cst_9 = arith.constant 3.200000e+01 : f32
    %13 = vector.broadcast %cst_9 : f32 to vector<8x16x1xf32>
    %14 = arith.divf %12, %13 : vector<8x16x1xf32>
    %15 = vector.broadcast %7 : vector<8x16x1xf32> to vector<8x16x32xf32>
    %16 = arith.subf %1, %15 : vector<8x16x32xf32>
    %cst_10 = arith.constant 9.99999974E-6 : f32
    %17 = vector.broadcast %cst_10 : f32 to vector<8x16x1xf32>
    %18 = arith.addf %14, %17 : vector<8x16x1xf32>
    %19 = math.rsqrt %18 : vector<8x16x1xf32>
    %20 = vector.broadcast %19 : vector<8x16x1xf32> to vector<8x16x32xf32>
    %21 = arith.mulf %16, %20 : vector<8x16x32xf32>
    %22 = vector.shape_cast %2 : vector<1x32xf32> to vector<1x1x32xf32>
    %23 = vector.broadcast %22 : vector<1x1x32xf32> to vector<8x16x32xf32>
    %24 = arith.mulf %21, %23 : vector<8x16x32xf32>
    %25 = vector.shape_cast %3 : vector<1x32xf32> to vector<1x1x32xf32>
    %26 = vector.broadcast %25 : vector<1x1x32xf32> to vector<8x16x32xf32>
    %27 = arith.addf %24, %26 : vector<8x16x32xf32>
    %28 = vector.shape_cast %27 : vector<8x16x32xf32> to vector<128x32xf32>
    %29 = arith.truncf %28 : vector<128x32xf32> to vector<128x32xbf16>
    %c0_11 = arith.constant 0 : index
    %c0_12 = arith.constant 0 : index
    %30 = vector.load %arg5[%c0_11, %c0_12] : memref<32x4xbf16, #tpu.memory_space<vmem>>, vector<32x4xbf16>
    %cst_13 = arith.constant dense<0.000000e+00> : vector<128x4xf32>
    %31 = tpu.matmul %29, %30, %cst_13 {dimension_numbers = #tpu.dot_dimension_numbers<[1], [0], [0], [1], [0, 0, 1, 1], [], []>} : vector<128x32xbf16>, vector<32x4xbf16>, vector<128x4xf32> -> vector<128x4xf32>
    %32 = vector.shape_cast %31 : vector<128x4xf32> to vector<8x16x4xf32>
    %c0_14 = arith.constant 0 : index
    %c0_15 = arith.constant 0 : index
    %c0_16 = arith.constant 0 : index
    %c0_17 = arith.constant 0 : index
    %33 = vector.load %arg6[%c0_14, %c0_15, %c0_16, %c0_17] : memref<1x8x16x4xf32, #tpu.memory_space<vmem>>, vector<1x8x16x4xf32>
    %34 = vector.shape_cast %33 : vector<1x8x16x4xf32> to vector<8x16x4xf32>
    %35 = vector.shape_cast %32 : vector<8x16x4xf32> to vector<1x8x16x4xf32>
    tpu.vector_store %arg6[%c0_14, %c0_15, %c0_16, %c0_17], %35 {strides = array<i32>} : memref<1x8x16x4xf32, #tpu.memory_space<vmem>>, vector<1x8x16x4xf32>,
    return
  }
  func.func @transform_0(%arg0: i32, %arg1: i32) -> (i32, i32, i32, i32) {
    %c0_i32 = arith.constant 0 : i32
    %c0_i32_0 = arith.constant 0 : i32
    %c0_i32_1 = arith.constant 0 : i32
    return %arg0, %arg1, %c0_i32, %c0_i32_0 : i32, i32, i32, i32
  }
  func.func @transform_1(%arg0: i32, %arg1: i32) -> (i32, i32) {
    %c0_i32 = arith.constant 0 : i32
    %c0_i32_0 = arith.constant 0 : i32
    %c0_i32_1 = arith.constant 0 : i32
    return %c0_i32, %c0_i32_0 : i32, i32
  }
  func.func @transform_2(%arg0: i32, %arg1: i32) -> (i32, i32) {
    %c0_i32 = arith.constant 0 : i32
    %c0_i32_0 = arith.constant 0 : i32
    %c0_i32_1 = arith.constant 0 : i32
    return %c0_i32, %c0_i32_0 : i32, i32
  }
  func.func @transform_3(%arg0: i32, %arg1: i32) -> (i32, i32) {
    %c0_i32 = arith.constant 0 : i32
    %c0_i32_0 = arith.constant 0 : i32
    %c0_i32_1 = arith.constant 0 : i32
    return %c0_i32, %c0_i32_0 : i32, i32
  }
  func.func @transform_4(%arg0: i32, %arg1: i32) -> (i32, i32, i32, i32) {
    %c0_i32 = arith.constant 0 : i32
    %c0_i32_0 = arith.constant 0 : i32
    %c0_i32_1 = arith.constant 0 : i32
    return %arg0, %arg1, %c0_i32, %c0_i32_0 : i32, i32, i32, i32
  }
}

</mosaic_0001>

<bundles_post_ra>
// kernel: tpu_custom_call.1
= control target key start
LH: loop header
LB: loop body
LE: loop exit
PB: predicated region body
PF: predicated region fallthrough
CT: control target
= control target key end

     0   :  { %9 = vsyncpa [#allocation3], 0  ;;  %s1497_s0 = inlined_call_operand.hbm [shape: f32[2,16,16,32], index: 0, kind: input, shape index: {}]   ;;  %s1498_s1 = inlined_call_operand.vmem [shape: f32[1,32], index: 1, kind: input, shape index: {}]   ;;  %s1499_s2 = inlined_call_operand.vmem [shape: f32[1,32], index: 2, kind: input, shape index: {}]   ;;  %s1500_s3 = inlined_call_operand.vmem [shape: bf16[32,4], index: 3, kind: input, shape index: {}]   ;;  %s1501_s4 = inlined_call_operand.vmem [shape: f32[2,16,16,4], index: 4, kind: output, shape index: {}]  }
   0x1   :  { %11 = vsyncpa [#allocation3 + $0x1], 0  ;;  %s1085_s15 = smov 0   ;;  %s1087_s16 = smov 0  }
   0x2   :  { %s1089_s17 = smov 0   ;;  %s1091_s18 = smov 0  }
   0x3   :  { %s1093_s19 = smov 0   ;;  %s1095_s20 = smov 0  }
   0x4   :  { %s1097_s21 = smov 0   ;;  %s1099_s22 = smov 0  }
   0x5 LB: > { %s788_s23 = sadd.s32 4294967295, %s1055_s22   ;;  %s26_s24 = sadd.s32 1, %s1047_s20  ;;  %s1055_s22 = sphi %s1099_s22, %s17_s22   ;;  %s1051_s21 = sphi %s1097_s21, %s1515_s21   ;;  %s1047_s20 = sphi %s1095_s20, %s1514_s20   ;;  %s1043_s19 = sphi %s1093_s19, %s1513_s19   ;;  %s1039_s18 = sphi %s1091_s18, %s1512_s18   ;;  %s1035_s17 = sphi %s1089_s17, %s1511_s17   ;;  %s1031_s16 = sphi %s1087_s16, %s1510_s16   ;;  %s1027_s15 = sphi %s1085_s15, %s1509_s15  }
   0x6   : > { %p27_p0 = scmp.ge.s32.totalorder %s26_s24, 2  ;;  %s29_s25 = sadd.s32 1, %s1051_s21 }
   0x7   : > { %s38_s26 = sadd.s32 1, %s1035_s17  ;;  %p45_p1 = scmp.ne.s32.totalorder %s1035_s17, %s1031_s16 }
   0x8   : > { %s1517_s24 = smov (%p27_p0, %s26_s24), 0  ;;  %s1519_s25 = smov (!%p27_p0, %s29_s25), %s1051_s21 }
   0x9   : > { %s34_s27 = ssub.s32 %s1047_s20, %s1517_s24  ;;  %p46_p2 = scmp.eq.s32.totalorder %s1055_s22, 0 }
   0xa   : > { %p31_p3 = scmp.ge.s32.totalorder %s1519_s25, 2  ;;  %p51_p4 = scmp.ne.s32.totalorder %s1031_s16, %s1027_s15 }
   0xb   : > { %p1136_p5 = por %p46_p2, %p45_p1  ;;  %p52_p6 = scmp.eq.s32.totalorder %s788_s23, 0 }
   0xc   : > { %s1521_s25 = smov (%p31_p3, %s1519_s25), 0  ;;  %p858_p8 = scmp.lt.s32.totalorder %s1055_s22, 4 }
   0xd   : > { %1504 = sst [smem:[#allocation5_spill]] %s1521_s25  ;;  %p1142_p7 = por %p52_p6, %p51_p4 }
   0xe   : > { %s33_s30 = ssub.s32 %s1051_s21, %s1521_s25  ;;  %s175_s6 = sand.u32 1, %s1035_s17  }
   0xf   : > { %s35_s5 = sor.u32 %s34_s27, %s33_s30  ;;  %s792_s7 = sshll.u32 %s175_s6, 7 }
  0x10   : > { %p36_p9 = scmp.eq.s32.totalorder %s35_s5, 0  ;;  %s817_s8 = sshll.u32 %s1047_s20, 4 }
  0x11   : > { %s795_s10 = sshll.u32 %s1051_s21, 5  ;;  %s179_s12 = scalar_lea.vmem [#allocation2], %s792_s7 }
  0x12   : > { %s1152_s9 = scalar_select %p36_p9, %s1035_s17, %s38_s26  }
  0x13   : > { %s186_s11 = sadd.s32 %s817_s8, %s795_s10  ;;  %s189_s13 = sshll.u32 %s179_s12, 4  ;;  %s1155_s13 = int_to_ptr.vmem [resolvable:$true] %s189_s13 }
  0x14   : > { %s796_s14 = sshll.u32 %s186_s11, 7  ;;  %p1166_p10 = pnand %p858_p8, %p1136_p5 }
  0x15   : > { %s1160_s25 = scalar_lea.hbm %s1497_s0, %s796_s14  ;;  %s1171_s27 = scalar_lea.sflag [#allocation3], %s175_s6 }
  0x16   : > { %s959_s30 = scalar_lea.hbm %s1160_s25, 2048  ;;  %p961_p13 = pneg %p1166_p10 }
  0x17   : > { %p960_p12 = scmp.ne.s32.totalorder %s1160_s25, %s959_s30  ;;  %s964_s7 = scalar_lea.hbm %s1497_s0, 8192 }
  0x18   : > { %p965_p2 = scmp.lt.u32.totalorder %s1160_s25, %s1497_s0  ;;  %p966_p3 = scmp.lt.u32.totalorder %s964_s7, %s959_s30 }
  0x19   : > { %p962_p0 = pnand %p961_p13, %p960_p12  ;;  %p968_p5 = scmp.lt.u32.totalorder %s959_s30, %s1160_s25 }
  0x1a   : > { %p967_p4 = por %p966_p3, %p965_p2 }
  0x1b   : > { %p963_p1 = pneg %p962_p0 }
  0x1c   : > { %p969_p6 = por %p968_p5, %p967_p4 }
  0x1e   : > { %p970_p8 = pnand %p969_p6, %p963_p1 }
  0x20   : > { %973 = shalt.err (!%p970_p8)
}
  0x21   : > { %s974_s6 = scalar_lea.vmem %s1155_s13, 2048  ;;  %s1057_s11 = smov [#allocation2]  }
  0x22   : > { %p975_p9 = scmp.ne.s32.totalorder %s1155_s13, %s974_s6  ;;  %s979_s12 = sshll.u32 %s1057_s11, 4  ;;  %s980_s12 = int_to_ptr.vmem [resolvable:$false] %s979_s12 }
  0x23   : > { %s981_s14 = scalar_lea.vmem %s980_s12, 4096  ;;  %p982_p11 = scmp.lt.s32.totalorder %s1155_s13, %s980_s12 }
  0x24   : > { %p977_p12 = pnand %p975_p9, %p961_p13  ;;  %p983_p2 = scmp.lt.s32.totalorder %s981_s14, %s974_s6 }
  0x26   : > { %p978_p0 = pneg %p977_p12  ;;  %p984_p3 = por %p983_p2, %p982_p11 }
  0x28   : > { %p985_p4 = pnand %p984_p3, %p978_p0 }
  0x2a   : > { %988 = shalt.err (!%p985_p4)
}
  0x2b   : > { %s1058_s15 = smov 128   ;;  %s1059_s23 = smov 8  }
  0x2c   : > { %857 = dma.hbm_to_vmem [thread:$0]  (!%p1166_p10), %s1160_s25, 2048, %s1155_s13, %s1171_s27, %s1058_s15, %s1058_s15, %s1059_s23  }
  0x2d   : > { %p197_p13 = scmp.lt.s32.totalorder %s1055_s22, 5  ;;  %p1507_p1 = scmp.ge.s32.totalorder %s1055_s22, 1 }
  0x2f   : > { %p198_p5 = pnand %p1507_p1, %p197_p13 }
  0x30   : > { %s203_s30 = sand.u32 (!%p198_p5), 1, %s1031_s16  }
  0x31   : > { %201 = sbr.rel (%p198_p5) target bundleno = 621 (0x26d), region = 36  ;;  %s798_s28 = sshll.u32 (!%p198_p5), %s203_s30, 7 }
  0x32   : > { %s204_s5 = scalar_lea.sflag (!%p198_p5), [#allocation3], %s203_s30  ;;  %s1203_s7 = scalar_lea.vmem (!%p198_p5), [#allocation2], %s798_s28 }
  0x38   : > { %1022 = dma.done.wait (%p1142_p7), %s204_s5, 2048  }
  0x39   : > { %1024 = vsyncadd (%p1142_p7), %s204_s5, 4294965248  ;;  %vm268_vm0 = vcmask 261120   ;;  %v250_v0 = vld [vmem:[%s1203_s7] sm:$0xff]  ;;  %v251_v2 = vld [vmem:[%s1203_s7 + $0x8] sm:$0xff]  ;;  %s799_s11 = sshll.u32 %s1039_s18, 3  ;;  %p239_p7 = scmp.lt.s32.totalorder %s1043_s19, 1 }
  0x3a   : > { %v258_v1 = vld [vmem:[%s1203_s7 + $0x40] sm:$0xff]  ;;  %v269_v3 = vsel %vm268_vm0, %v250_v0, 0.0  ;;  %v259_v5 = vld [vmem:[%s1203_s7 + $0x48] sm:$0xff]  ;;  %v272_v6 = vsel %vm268_vm0, %v251_v2, 0.0  ;;  %v252_v8 = vld [vmem:[%s1203_s7 + $0x10] sm:$0xff]  ;;  %p241_p10 = scmp.lt.s32.totalorder %s799_s11, 15 }
  0x3b   : > { %v293_v4 = vsel %vm268_vm0, %v258_v1, 0.0  ;;  %270 = vadd.xlane.f32.xlu0 %v269_v3  ;;  %v296_v7 = vsel %vm268_vm0, %v259_v5, 0.0  ;;  %v253_v9 = vld [vmem:[%s1203_s7 + $0x18] sm:$0xff]  ;;  %v275_v10 = vsel %vm268_vm0, %v252_v8, 0.0  ;;  %v1222_v12 = vld [vmem:[%s1203_s7 + $0x50] sm:$0xff]  ;;  %v1232_v16 = vld [vmem:[%s1203_s7 + $0x20] sm:$0xff] }
  0x3c   : > { %294 = vadd.xlane.f32.xlu1 %v293_v4  ;;  %v278_v11 = vsel %vm268_vm0, %v253_v9, 0.0  ;;  %v1225_v13 = vld [vmem:[%s1203_s7 + $0x58] sm:$0xff]  ;;  %v299_v14 = vsel %vm268_vm0, %v1222_v12, 0.0  ;;  %v1235_v17 = vld [vmem:[%s1203_s7 + $0x28] sm:$0xff]  ;;  %v281_v18 = vsel %vm268_vm0, %v1232_v16, 0.0  ;;  %v1242_v20 = vld [vmem:[%s1203_s7 + $0x60] sm:$0xff] }
  0x3d   : > { %v302_v15 = vsel %vm268_vm0, %v1225_v13, 0.0  ;;  %v284_v19 = vsel %vm268_vm0, %v1235_v17, 0.0  ;;  %v1245_v21 = vld [vmem:[%s1203_s7 + $0x68] sm:$0xff]  ;;  %v305_v22 = vsel %vm268_vm0, %v1242_v20, 0.0  ;;  %v1252_v24 = vld [vmem:[%s1203_s7 + $0x30] sm:$0xff]  ;;  %v1255_v25 = vld [vmem:[%s1203_s7 + $0x38] sm:$0xff] }
  0x3e   : > { %v308_v23 = vsel %vm268_vm0, %v1245_v21, 0.0  ;;  %v287_v26 = vsel %vm268_vm0, %v1252_v24, 0.0  ;;  %v290_v27 = vsel %vm268_vm0, %v1255_v25, 0.0  ;;  %v1262_v28 = vld [vmem:[%s1203_s7 + $0x70] sm:$0xff]  ;;  %v1265_v29 = vld [vmem:[%s1203_s7 + $0x78] sm:$0xff]  ;;  %s1523_s19 = smov (!%p239_p7, %s1043_s19), 1 }
  0x3f   : > { %273 = vadd.xlane.f32.xlu0 %v272_v6  ;;  %v311_v30 = vsel %vm268_vm0, %v1262_v28, 0.0  ;;  %v314_v31 = vsel %vm268_vm0, %v1265_v29, 0.0  ;;  %s1525_s11 = smov (!%p241_p10, %s799_s11), 15  ;;  %s801_s14 = sshll.u32 %s1523_s19, 5  ;;  %vm667_vm1 = vcmask 31744  }
  0x40   : > { %297 = vadd.xlane.f32.xlu1 %v296_v7  ;;  %s800_s12 = sshll.u32 %s1525_s11, 1 }
  0x41   : > { %s245_s15 = sadd.s32 %s801_s14, %s800_s12 }
  0x42   : > { %s802_s23 = sshll.u32 %s245_s15, 3 }
  0x43   : > { %276 = vadd.xlane.f32.xlu0 %v275_v10  ;;  %s1439_s5 = scalar_lea.vmem %s1501_s4, %s802_s23 }
  0x44   : > { %279 = vadd.xlane.f32.xlu1 %v278_v11 }
  0x47   : > { %300 = vadd.xlane.f32.xlu0 %v299_v14 }
  0x48   : > { %303 = vadd.xlane.f32.xlu1 %v302_v15 }
  0x4b   : > { %282 = vadd.xlane.f32.xlu0 %v281_v18 }
  0x4c   : > { %285 = vadd.xlane.f32.xlu1 %v284_v19 }
  0x4f   : > { %306 = vadd.xlane.f32.xlu0 %v305_v22 }
  0x50   : > { %309 = vadd.xlane.f32.xlu1 %v308_v23 }
  0x53   : > { %288 = vadd.xlane.f32.xlu0 %v287_v26 }
  0x54   : > { %291 = vadd.xlane.f32.xlu1 %v290_v27 }
  0x57   : > { %312 = vadd.xlane.f32.xlu0 %v311_v30 }
  0x58   : > { %315 = vadd.xlane.f32.xlu1 %v314_v31 }
  0xc8   : > { %v271_v32 = vpop.xlane.xlu0 %270 }
  0xc9   : > { %v295_v33 = vpop.xlane.xlu1 %294  ;;  %v318_v34 = vmul.f32 0.03125, %v271_v32 }
  0xca   : > { %v326_v35 = vmul.f32 0.03125, %v295_v33 }
  0xcb   : > { %v1271_v36 = vsub.f32 %v250_v0, %v318_v34 }
  0xcc   : > { %v1273_v37 = vsub.f32 %v258_v1, %v326_v35  ;;  %v274_v38 = vpop.xlane.xlu0 %273 }
  0xcd   : > { %v298_v39 = vpop.xlane.xlu1 %297  ;;  %v319_v40 = vmul.f32 0.03125, %v274_v38  ;;  %v350_v42 = vmul.f32 %v1271_v36, %v1271_v36 }
  0xce   : > { %v327_v41 = vmul.f32 0.03125, %v298_v39  ;;  %v358_v43 = vmul.f32 %v1273_v37, %v1273_v37 }
  0xcf   : > { %v1279_v44 = vsub.f32 %v251_v2, %v319_v40  ;;  %v366_v46 = vsel %vm268_vm0, %v350_v42, 0.0 }
  0xd0   : > { %v1281_v45 = vsub.f32 %v259_v5, %v327_v41  ;;  %367 = vadd.xlane.f32.xlu0 %v366_v46  ;;  %v277_v47 = vpop.xlane.xlu0 %276  ;;  %v390_v49 = vsel %vm268_vm0, %v358_v43, 0.0 }
  0xd1   : > { %v280_v48 = vpop.xlane.xlu1 %279  ;;  %v320_v50 = vmul.f32 0.03125, %v277_v47  ;;  %v351_v52 = vmul.f32 %v1279_v44, %v1279_v44 }
  0xd2   : > { %v321_v51 = vmul.f32 0.03125, %v280_v48  ;;  %v359_v53 = vmul.f32 %v1281_v45, %v1281_v45 }
  0xd3   : > { %v1289_v54 = vsub.f32 %v252_v8, %v320_v50  ;;  %v369_v56 = vsel %vm268_vm0, %v351_v52, 0.0 }
  0xd4   : > { %v1291_v55 = vsub.f32 %v253_v9, %v321_v51  ;;  %391 = vadd.xlane.f32.xlu0 %v390_v49  ;;  %370 = vadd.xlane.f32.xlu1 %v369_v56  ;;  %v301_v57 = vpop.xlane.xlu0 %300  ;;  %v393_v59 = vsel %vm268_vm0, %v359_v53, 0.0  ;;  %v926_v53 = vld [vmem:[%s1500_s3 + $0x8] sm:$0xff]  }
  0xd5   : > { %v304_v58 = vpop.xlane.xlu1 %303  ;;  %v328_v60 = vmul.f32 0.03125, %v301_v57  ;;  %v352_v62 = vmul.f32 %v1289_v54, %v1289_v54 }
  0xd6   : > { %v329_v61 = vmul.f32 0.03125, %v304_v58  ;;  %v353_v63 = vmul.f32 %v1291_v55, %v1291_v55 }
  0xd7   : > { %v1300_v0 = vsub.f32 %v1222_v12, %v328_v60  ;;  %v372_v2 = vsel %vm268_vm0, %v352_v62, 0.0 }
  0xd8   : > { %v1303_v1 = vsub.f32 %v1225_v13, %v329_v61  ;;  %394 = vadd.xlane.f32.xlu1 %v393_v59  ;;  %373 = vadd.xlane.f32.xlu0 %v372_v2  ;;  %v283_v3 = vpop.xlane.xlu0 %282  ;;  %v375_v5 = vsel %vm268_vm0, %v353_v63, 0.0 }
  0xd9   : > { %v286_v4 = vpop.xlane.xlu1 %285  ;;  %v322_v6 = vmul.f32 0.03125, %v283_v3  ;;  %v360_v8 = vmul.f32 %v1300_v0, %v1300_v0 }
  0xda   : > { %v323_v7 = vmul.f32 0.03125, %v286_v4  ;;  %v361_v9 = vmul.f32 %v1303_v1, %v1303_v1 }
  0xdb   : > { %v1312_v10 = vsub.f32 %v1232_v16, %v322_v6  ;;  %v396_v12 = vsel %vm268_vm0, %v360_v8, 0.0 }
  0xdc   : > { %v1315_v11 = vsub.f32 %v1235_v17, %v323_v7  ;;  %376 = vadd.xlane.f32.xlu1 %v375_v5  ;;  %397 = vadd.xlane.f32.xlu0 %v396_v12  ;;  %v307_v13 = vpop.xlane.xlu0 %306  ;;  %v399_v15 = vsel %vm268_vm0, %v361_v9, 0.0 }
  0xdd   : > { %v310_v14 = vpop.xlane.xlu1 %309  ;;  %v330_v18 = vmul.f32 0.03125, %v307_v13  ;;  %v354_v22 = vmul.f32 %v1312_v10, %v1312_v10 }
  0xde   : > { %v331_v19 = vmul.f32 0.03125, %v310_v14  ;;  %v355_v16 = vmul.f32 %v1315_v11, %v1315_v11 }
  0xdf   : > { %v1324_v23 = vsub.f32 %v1242_v20, %v330_v18  ;;  %v378_v26 = vsel %vm268_vm0, %v354_v22, 0.0 }
  0xe0   : > { %v1327_v17 = vsub.f32 %v1245_v21, %v331_v19  ;;  %400 = vadd.xlane.f32.xlu1 %v399_v15  ;;  %379 = vadd.xlane.f32.xlu0 %v378_v26  ;;  %v289_v27 = vpop.xlane.xlu0 %288  ;;  %v381_v31 = vsel %vm268_vm0, %v355_v16, 0.0 }
  0xe1   : > { %v292_v30 = vpop.xlane.xlu1 %291  ;;  %v324_v32 = vmul.f32 0.03125, %v289_v27  ;;  %v362_v34 = vmul.f32 %v1324_v23, %v1324_v23 }
  0xe2   : > { %v325_v33 = vmul.f32 0.03125, %v292_v30  ;;  %v363_v20 = vmul.f32 %v1327_v17, %v1327_v17 }
  0xe3   : > { %v1336_v35 = vsub.f32 %v1252_v24, %v324_v32  ;;  %v402_v38 = vsel %vm268_vm0, %v362_v34, 0.0 }
  0xe4   : > { %v1339_v21 = vsub.f32 %v1255_v25, %v325_v33  ;;  %382 = vadd.xlane.f32.xlu1 %v381_v31  ;;  %403 = vadd.xlane.f32.xlu0 %v402_v38  ;;  %v313_v39 = vpop.xlane.xlu0 %312  ;;  %v405_v41 = vsel %vm268_vm0, %v363_v20, 0.0  ;;  %v1371_v31 = vld [vmem:[%s1498_s1] ss:$0 sm:$0xff] }
  0xe5   : > { %v316_v40 = vpop.xlane.xlu1 %315  ;;  %v332_v42 = vmul.f32 0.03125, %v313_v39  ;;  %v356_v46 = vmul.f32 %v1336_v35, %v1336_v35 }
  0xe6   : > { %v333_v43 = vmul.f32 0.03125, %v316_v40  ;;  %v357_v24 = vmul.f32 %v1339_v21, %v1339_v21 }
  0xe7   : > { %v1348_v47 = vsub.f32 %v1262_v28, %v332_v42  ;;  %v384_v48 = vsel %vm268_vm0, %v356_v46, 0.0 }
  0xe8   : > { %v1351_v25 = vsub.f32 %v1265_v29, %v333_v43  ;;  %406 = vadd.xlane.f32.xlu1 %v405_v41  ;;  %385 = vadd.xlane.f32.xlu0 %v384_v48  ;;  %v387_v49 = vsel %vm268_vm0, %v357_v24, 0.0  ;;  %v925_v29 = vld [vmem:[%s1500_s3] sm:$0xff]  }
  0xe9   : > { %v364_v50 = vmul.f32 %v1348_v47, %v1348_v47  ;;  %828 = vmatprep.subr.bf16.mxu0 %v925_v29  ;;  %848 = vmatprep.subr.bf16.mxu1 %v925_v29  ;;  %v1378_v43 = vld [vmem:[%s1499_s2] ss:$0 sm:$0xff] }
  0xea   : > { %v365_v51 = vmul.f32 %v1351_v25, %v1351_v25  ;;  %829 = vmatpush3.bf16.msra.mxu0 %v925_v29  ;;  %850 = vmatpush3.bf16.msra.mxu1 %v925_v29 }
  0xeb   : > { %v408_v52 = vsel %vm268_vm0, %v364_v50, 0.0  ;;  %830 = vmatprep.subr.bf16.mxu0 %v926_v53  ;;  %849 = vmatprep.subr.bf16.mxu1 %v926_v53 }
  0xec   : > { %388 = vadd.xlane.f32.xlu1 %v387_v49  ;;  %409 = vadd.xlane.f32.xlu0 %v408_v52  ;;  %v411_v28 = vsel %vm268_vm0, %v365_v51, 0.0 }
  0xee   : > { %831 = vmatpush3.bf16.msra.mxu0 %v926_v53  ;;  %851 = vmatpush3.bf16.msra.mxu1 %v926_v53 }
  0xf0   : > { %412 = vadd.xlane.f32.xlu1 %v411_v28 }
 0x15d   : > { %v368_v56 = vpop.xlane.xlu0 %367 }
 0x15e   : > { %v414_v57 = vmul.f32 0.03125, %v368_v56 }
 0x160   : > { %v430_v58 = vadd.f32 1e-05, %v414_v57 }
 0x161   : > { %v371_v59 = vpop.xlane.xlu1 %370  ;;  %v392_v60 = vpop.xlane.xlu0 %391 }
 0x162   : > { %927 = vrsqrt.f32 %v430_v58  ;;  %v415_v61 = vmul.f32 0.03125, %v371_v59  ;;  %v422_v62 = vmul.f32 0.03125, %v392_v60 }
 0x164   : > { %v431_v63 = vadd.f32 1e-05, %v415_v61  ;;  %v438_v2 = vadd.f32 1e-05, %v422_v62 }
 0x165   : > { %v395_v3 = vpop.xlane.xlu1 %394  ;;  %v374_v4 = vpop.xlane.xlu0 %373 }
 0x166   : > { %929 = vrsqrt.f32 %v431_v63  ;;  %v423_v5 = vmul.f32 0.03125, %v395_v3  ;;  %v416_v6 = vmul.f32 0.03125, %v374_v4 }
 0x167   : > { %931 = vrsqrt.f32 %v438_v2 }
 0x168   : > { %v439_v7 = vadd.f32 1e-05, %v423_v5  ;;  %v432_v8 = vadd.f32 1e-05, %v416_v6 }
 0x169   : > { %v377_v9 = vpop.xlane.xlu1 %376  ;;  %v398_v12 = vpop.xlane.xlu0 %397 }
 0x16a   : > { %933 = vrsqrt.f32 %v439_v7  ;;  %v417_v13 = vmul.f32 0.03125, %v377_v9  ;;  %v424_v14 = vmul.f32 0.03125, %v398_v12 }
 0x16b   : > { %935 = vrsqrt.f32 %v432_v8 }
 0x16c   : > { %v928_v15 = vpop.eup %927  ;;  %v433_v18 = vadd.f32 1e-05, %v417_v13  ;;  %v440_v19 = vadd.f32 1e-05, %v424_v14 }
 0x16d   : > { %v401_v22 = vpop.xlane.xlu1 %400  ;;  %v380_v16 = vpop.xlane.xlu0 %379  ;;  %v462_v26 = vmul.f32 %v928_v15, %v1271_v36 }
 0x16e   : > { %937 = vrsqrt.f32 %v433_v18  ;;  %v425_v27 = vmul.f32 0.03125, %v401_v22  ;;  %v418_v30 = vmul.f32 0.03125, %v380_v16 }
 0x16f   : > { %939 = vrsqrt.f32 %v440_v19  ;;  %v484_v41 = vmul.f32 %v1371_v31, %v462_v26 }
 0x170   : > { %v930_v32 = vpop.eup %929  ;;  %v441_v33 = vadd.f32 1e-05, %v425_v27  ;;  %v434_v34 = vadd.f32 1e-05, %v418_v30 }
 0x171   : > { %v932_v20 = vpop.eup %931  ;;  %v383_v38 = vpop.xlane.xlu1 %382  ;;  %v463_v40 = vmul.f32 %v930_v32, %v1279_v44  ;;  %v506_v28 = vadd.f32 %v1378_v43, %v484_v41 }
 0x172   : > { %v404_v39 = vpop.xlane.xlu0 %403  ;;  %941 = vrsqrt.f32 %v441_v33  ;;  %v419_v36 = vmul.f32 0.03125, %v383_v38  ;;  %v470_v46 = vmul.f32 %v932_v20, %v1273_v37 }
 0x173   : > { %v426_v42 = vmul.f32 0.03125, %v404_v39  ;;  %943 = vrsqrt.f32 %v434_v34  ;;  %v485_v24 = vmul.f32 %v1371_v31, %v463_v40 }
 0x174   : > { %v934_v48 = vpop.eup %933  ;;  %v435_v49 = vadd.f32 1e-05, %v419_v36  ;;  %v492_v56 = vmul.f32 %v1371_v31, %v470_v46 }
 0x175   : > { %v442_v50 = vadd.f32 1e-05, %v426_v42  ;;  %v936_v51 = vpop.eup %935  ;;  %v407_v44 = vpop.xlane.xlu1 %406  ;;  %v507_v29 = vadd.f32 %v1378_v43, %v485_v24  ;;  %v471_v53 = vmul.f32 %v934_v48, %v1281_v45 }
 0x176   : > { %v386_v52 = vpop.xlane.xlu0 %385  ;;  %v464_v57 = vmul.f32 %v936_v51, %v1289_v54  ;;  %945 = vrsqrt.f32 %v435_v49  ;;  %v427_v37 = vmul.f32 0.03125, %v407_v44  ;;  %v514_v5 = vadd.f32 %v1378_v43, %v492_v56 }
 0x177   : > { %v420_v58 = vmul.f32 0.03125, %v386_v52  ;;  %947 = vrsqrt.f32 %v442_v50  ;;  %v522_v59 = vpack.c.bf16 %v507_v29, %v506_v28  ;;  %v493_v60 = vmul.f32 %v1371_v31, %v471_v53 }
 0x178   : > { %v938_v61 = vpop.eup %937  ;;  %v443_v62 = vadd.f32 1e-05, %v427_v37  ;;  %v486_v6 = vmul.f32 %v1371_v31, %v464_v57 }
 0x179   : > { %v436_v63 = vadd.f32 1e-05, %v420_v58  ;;  %v940_v2 = vpop.eup %939  ;;  %v465_v3 = vmul.f32 %v938_v61, %v1291_v55  ;;  %v389_v4 = vpop.xlane.xlu1 %388  ;;  %832 = vmatprep.mubr.msk.bf16.mxu0 %vm268_vm0, %v522_v59  ;;  %v515_v54 = vadd.f32 %v1378_v43, %v493_v60 }
 0x17a   : > { %v410_v45 = vpop.xlane.xlu0 %409  ;;  %v472_v7 = vmul.f32 %v940_v2, %v1300_v0  ;;  %949 = vrsqrt.f32 %v443_v62  ;;  %v421_v8 = vmul.f32 0.03125, %v389_v4  ;;  %v508_v16 = vadd.f32 %v1378_v43, %v486_v6 }
 0x17b   : > { %v428_v9 = vmul.f32 0.03125, %v410_v45  ;;  %951 = vrsqrt.f32 %v436_v63  ;;  %v526_v12 = vpack.c.bf16 %v515_v54, %v514_v5  ;;  %v487_v13 = vmul.f32 %v1371_v31, %v465_v3 }
 0x17c   : > { %v942_v55 = vpop.eup %941  ;;  %v437_v14 = vadd.f32 1e-05, %v421_v8  ;;  %v494_v26 = vmul.f32 %v1371_v31, %v472_v7 }
 0x17d   : > { %v444_v15 = vadd.f32 1e-05, %v428_v9  ;;  %v944_v18 = vpop.eup %943  ;;  %v473_v19 = vmul.f32 %v942_v55, %v1303_v1  ;;  %v413_v22 = vpop.xlane.xlu1 %412  ;;  %840 = vmatprep.mubr.msk.bf16.mxu1 %vm268_vm0, %v526_v12  ;;  %v509_v0 = vadd.f32 %v1378_v43, %v487_v13 }
 0x17e   : > { %v466_v27 = vmul.f32 %v944_v18, %v1312_v10  ;;  %953 = vrsqrt.f32 %v437_v14  ;;  %v429_v30 = vmul.f32 0.03125, %v413_v22  ;;  %v516_v39 = vadd.f32 %v1378_v43, %v494_v26 }
 0x17f   : > { %955 = vrsqrt.f32 %v444_v15  ;;  %v523_v32 = vpack.c.bf16 %v509_v0, %v508_v16  ;;  %v495_v33 = vmul.f32 %v1371_v31, %v473_v19 }
 0x180   : > { %v946_v34 = vpop.eup %945  ;;  %v445_v20 = vadd.f32 1e-05, %v429_v30  ;;  %v488_v41 = vmul.f32 %v1371_v31, %v466_v27 }
 0x181   : > { %v948_v1 = vpop.eup %947  ;;  %v467_v38 = vmul.f32 %v946_v34, %v1315_v11  ;;  %833 = vmatmul.mubr.msk.bf16.vlgmr.msra.gmra.mrb[0].mxu0 %vm268_vm0, %v523_v32  ;;  %v517_v40 = vadd.f32 %v1378_v43, %v495_v33 }
 0x182   : > { %v474_v10 = vmul.f32 %v948_v1, %v1324_v23  ;;  %957 = vrsqrt.f32 %v445_v20  ;;  %v510_v11 = vadd.f32 %v1378_v43, %v488_v41 }
 0x183   : > { %v527_v36 = vpack.c.bf16 %v517_v40, %v516_v39  ;;  %v489_v42 = vmul.f32 %v1371_v31, %v467_v38 }
 0x184   : > { %v950_v46 = vpop.eup %949  ;;  %v496_v50 = vmul.f32 %v1371_v31, %v474_v10 }
 0x185   : > { %v952_v24 = vpop.eup %951  ;;  %v475_v48 = vmul.f32 %v950_v46, %v1327_v17  ;;  %841 = vmatmul.mubr.msk.bf16.vlgmr.msra.gmra.mrb[0].mxu1 %vm268_vm0, %v527_v36  ;;  %v511_v49 = vadd.f32 %v1378_v43, %v489_v42 }
 0x186   : > { %v468_v51 = vmul.f32 %v952_v24, %v1336_v35  ;;  %v518_v17 = vadd.f32 %v1378_v43, %v496_v50 }
 0x187   : > { %v524_v44 = vpack.c.bf16 %v511_v49, %v510_v11  ;;  %v497_v23 = vmul.f32 %v1371_v31, %v475_v48 }
 0x188   : > { %v954_v52 = vpop.eup %953  ;;  %v490_v56 = vmul.f32 %v1371_v31, %v468_v51 }
 0x189   : > { %v956_v28 = vpop.eup %955  ;;  %v469_v29 = vmul.f32 %v954_v52, %v1339_v21  ;;  %836 = vmatprep.mubr.msk.bf16.mxu0 %vm268_vm0, %v524_v44  ;;  %v519_v53 = vadd.f32 %v1378_v43, %v497_v23 }
 0x18a   : > { %v476_v57 = vmul.f32 %v956_v28, %v1348_v47  ;;  %v512_v21 = vadd.f32 %v1378_v43, %v490_v56 }
 0x18b   : > { %v528_v37 = vpack.c.bf16 %v519_v53, %v518_v17  ;;  %v491_v35 = vmul.f32 %v1371_v31, %v469_v29 }
 0x18c   : > { %v958_v58 = vpop.eup %957  ;;  %v498_v61 = vmul.f32 %v1371_v31, %v476_v57 }
 0x18d   : > { %v477_v59 = vmul.f32 %v958_v58, %v1351_v25  ;;  %844 = vmatprep.mubr.msk.bf16.mxu1 %vm268_vm0, %v528_v37  ;;  %v513_v60 = vadd.f32 %v1378_v43, %v491_v35 }
 0x18e   : > { %v520_v63 = vadd.f32 %v1378_v43, %v498_v61 }
 0x18f   : > { %v525_v62 = vpack.c.bf16 %v513_v60, %v512_v21  ;;  %v499_v47 = vmul.f32 %v1371_v31, %v477_v59 }
 0x191   : > { %837 = vmatmul.mubr.msk.bf16.gmra.mrb[4].mxu0 %vm268_vm0, %v525_v62  ;;  %v521_v2 = vadd.f32 %v1378_v43, %v499_v47 }
 0x193   : > { %v529_v3 = vpack.c.bf16 %v521_v2, %v520_v63 }
 0x195   : > { %845 = vmatmul.mubr.msk.bf16.gmra.mrb[4].mxu1 %vm268_vm0, %v529_v3 }
 0x254   : > { %v834_v25 = vpop.f32.mrb[0].mxu0 }
 0x255   : > { %670 = vst.msk [vmem:[%s1439_s5 + $0x10] sm:$0xff] %vm667_vm1, %v834_v25  ;;  %v604_v31 = vpop.f32.mrb[1].mxu0 }
 0x256   : > { %668 = vst.msk [vmem:[%s1439_s5] sm:$0xff] %vm667_vm1, %v604_v31  ;;  %v835_v43 = vpop.f32.mrb[2].mxu0 }
 0x257   : > { %671 = vst.msk [vmem:[%s1439_s5 + $0x18] sm:$0xff] %vm667_vm1, %v835_v43  ;;  %v607_v4 = vpop.f32.mrb[3].mxu0 }
 0x258   : > { %669 = vst.msk [vmem:[%s1439_s5 + $0x8] sm:$0xff] %vm667_vm1, %v607_v4  ;;  %v842_v45 = vpop.f32.mrb[0].mxu1 }
 0x259   : > { %678 = vst.msk [vmem:[%s1439_s5 + $0x50] sm:$0xff] %vm667_vm1, %v842_v45  ;;  %v636_v5 = vpop.f32.mrb[1].mxu1 }
 0x25a   : > { %676 = vst.msk [vmem:[%s1439_s5 + $0x40] sm:$0xff] %vm667_vm1, %v636_v5  ;;  %v843_v54 = vpop.f32.mrb[2].mxu1 }
 0x25b   : > { %679 = vst.msk [vmem:[%s1439_s5 + $0x58] sm:$0xff] %vm667_vm1, %v843_v54  ;;  %v639_v6 = vpop.f32.mrb[3].mxu1 }
 0x25c   : > { %677 = vst.msk [vmem:[%s1439_s5 + $0x48] sm:$0xff] %vm667_vm1, %v639_v6 }
 0x264   : > { %v838_v7 = vpop.f32.mrb[4].mxu0 }
 0x265   : > { %674 = vst.msk [vmem:[%s1439_s5 + $0x30] sm:$0xff] %vm667_vm1, %v838_v7  ;;  %v620_v8 = vpop.f32.mrb[5].mxu0 }
 0x266   : > { %672 = vst.msk [vmem:[%s1439_s5 + $0x20] sm:$0xff] %vm667_vm1, %v620_v8  ;;  %v839_v9 = vpop.f32.mrb[6].mxu0 }
 0x267   : > { %675 = vst.msk [vmem:[%s1439_s5 + $0x38] sm:$0xff] %vm667_vm1, %v839_v9  ;;  %v623_v12 = vpop.f32.mrb[7].mxu0 }
 0x268   : > { %673 = vst.msk [vmem:[%s1439_s5 + $0x28] sm:$0xff] %vm667_vm1, %v623_v12  ;;  %v846_v13 = vpop.f32.mrb[4].mxu1 }
 0x269   : > { %682 = vst.msk [vmem:[%s1439_s5 + $0x70] sm:$0xff] %vm667_vm1, %v846_v13  ;;  %v652_v55 = vpop.f32.mrb[5].mxu1 }
 0x26a   : > { %680 = vst.msk [vmem:[%s1439_s5 + $0x60] sm:$0xff] %vm667_vm1, %v652_v55  ;;  %v847_v14 = vpop.f32.mrb[6].mxu1 }
 0x26b   : > { %683 = vst.msk [vmem:[%s1439_s5 + $0x78] sm:$0xff] %vm667_vm1, %v847_v14  ;;  %v655_v15 = vpop.f32.mrb[7].mxu1 }
 0x26c   : > { %681 = vst.msk [vmem:[%s1439_s5 + $0x68] sm:$0xff] %vm667_vm1, %v655_v15 }
 0x26d PF: > { %s17_s22 = sadd.s32 1, %s1055_s22   ;;  %s1508_s7 = sld [smem:[#allocation5_spill]] }
 0x26e   : > { %p14_p11 = scmp.ge.s32.totalorder %s17_s22, 6   ;;  %s1509_s15 = smov %s1031_s16 }
 0x26f   : > { %s1510_s16 = smov %s1035_s17  ;;  %s1511_s17 = smov %s1152_s9 }
 0x270   : > { %s1512_s18 = smov %s1047_s20  ;;  %s1513_s19 = smov %s1051_s21 }
 0x271   : > { %s1514_s20 = smov %s1517_s24  ;;  %16 = sbr.rel (!%p14_p11) target bundleno = 5 (0x5), region = 76 }
 0x273   : > { %s1515_s21 = smov %s1508_s7 }
 0x278   :  { %716 = vsyncpa [#allocation3], 1 }
 0x279   :  { %718 = vsyncpa [#allocation3 + $0x1], 1 }

</bundles_post_ra>
